<compile_context>
chip_gen: v5e
topology: v5e:2x2
jax: 0.10.0
libtpu: 0.0.40
codegen_flags: <defaults>
</compile_context>

<pallas_src>
import numpy as np

import jax
import jax.numpy as jnp
from jax.experimental import pallas as pl
from jax.experimental.pallas import tpu as pltpu


def _round_up(x: int, m: int) -> int:
    return ((x + m - 1) // m) * m


def _vmem_capacity_bytes(default: int = 64 * 1024 * 1024) -> int:
    """Physical VMEM of the local chip (fallback: v7x's 64 MiB, safe everywhere)."""
    try:
        info = pltpu.get_tpu_info()
        return int(getattr(info, "vmem_capacity_bytes", default))
    except Exception:  # not on TPU / API unavailable
        return default


def _block_vmem_bytes(rows: int, cols: int, itemsize: int) -> int:
    """Conservative padded-VMEM footprint of one buffer of a [rows, cols] block."""
    return _round_up(rows, 8) * _round_up(cols, 128) * max(4, itemsize)


def glvq_kernel(x_ref, wt_ref, ptT_ref, ptn_ref, dis_ref):
    """One N-tile of pairwise distances.

    x_ref:   [TN, D]   sample tile (unpadded features, original dtype)
    wt_ref:  [D,  D]   omega.weight^T  (resident, mxu dtype)
    ptT_ref: [D,  Pp]  omega(prototypes)^T (resident, mxu dtype, P zero-padded)
    ptn_ref: [1,  Pp]  ||omega(prototypes)||^2 per prototype (resident, f32)
    dis_ref: [TN, Pp]  output distances for this tile (f32)
    """
    mxu = wt_ref.dtype

    # omega(x) for this tile: x @ W^T  (bias cancels in the distance) -> MXU,
    # f32 accumulation regardless of operand dtype.
    xm = x_ref[...].astype(mxu)
    xt = jnp.dot(xm, wt_ref[...], preferred_element_type=jnp.float32)      # [TN, D]

    # Round xt to the MXU dtype once so the row norms and the cross term see the
    # same values (reduces Gram-form cancellation error in bf16 mode).
    xtc = xt.astype(mxu)
    xf = xtc.astype(jnp.float32)
    # Row norms of transformed samples (f32, XLU lane reduce).
    # NOTE: if profiling ever shows the XLU binding (bf16 matmuls are cheap),
    # this can be moved onto the MXU as jnp.dot(xf*xf, ones[D,1]).
    xn = jnp.sum(xf * xf, axis=-1, keepdims=True)                          # [TN, 1]

    # Cross term in canonical [M,K]@[K,N] form -> zero in-kernel transposes.
    cross = jnp.dot(xtc, ptT_ref[...], preferred_element_type=jnp.float32)  # [TN, Pp]

    d2 = xn + ptn_ref[...] - 2.0 * cross
    # Clamp: Gram-form cancellation can yield tiny negatives -> NaN after sqrt.
    dis_ref[...] = jnp.sqrt(jnp.maximum(d2, 0.0))


def glvq_forward(x, protos, plabels, weight, bias, *, tn=1024,
                 mxu_dtype=jnp.bfloat16):
    """Forward of the GLVQ Model: returns (dis [N, P], plabels).

    `bias` is accepted for API parity with nn.Linear but cancels exactly in the
    pairwise distance (both x and prototypes pass through the same affine map),
    so it is not used in the computation.

    mxu_dtype: operand dtype for the two MXU matmuls. bfloat16 (default) runs at
    native MXU rate with f32 accumulation; pass jnp.float32 for exact mode.
    """
    del bias  # (omega(x) - omega(p)) = (x - p) @ W^T exactly; bias cancels.

    N, D = x.shape
    P, D2 = protos.shape
    assert D2 == D and tuple(weight.shape) == (D, D), (
        "this kernel assumes a square omega: weight must be [D, D]")

    f32 = jnp.float32
    mxu = np.dtype(mxu_dtype)

    # Tiny one-time precompute (P x D): transformed prototypes + squared norms.
    # Kept outside the kernel so they stay resident across the N-grid.
    pt = jnp.dot(protos.astype(f32), weight.astype(f32).T)                  # [P, D]
    pt_c = pt.astype(mxu)
    # Norms from the *cast* prototypes so they are consistent with the cross term.
    ptn = jnp.sum(pt_c.astype(f32) ** 2, axis=-1)                           # [P]

    # Only the prototype axis is padded (lane-dense output / cross-term N dim).
    Pp = _round_up(P, 128)
    # Tile over N: big enough to amortize per-step overhead, but capped so the
    # grid has >= 2 steps when possible (lets v7x's two TensorCores both work).
    TN = max(8, min(int(tn), _round_up(-(-N // 2), 8)))
    grid_n = pl.cdiv(N, TN)

    wt_p = weight.astype(f32).T.astype(mxu)                                 # [D, D]
    ptT_p = jnp.zeros((D, Pp), mxu).at[:, :P].set(pt_c.T)                   # [D, Pp]
    ptn_p = jnp.zeros((1, Pp), f32).at[0, :P].set(ptn)                      # [1, Pp]

    x_itemsize = np.dtype(x.dtype).itemsize

    # VMEM bookkeeping: derive the limit from the actual buffers (+ slack) and
    # cap at ~75% of physical VMEM (48 MiB on v7x, 96 MiB on v5e/v6e).
    resident_bytes = (_block_vmem_bytes(D, D, mxu.itemsize)
                      + _block_vmem_bytes(D, Pp, mxu.itemsize)
                      + _block_vmem_bytes(1, Pp, 4))
    pipelined_bytes = (_block_vmem_bytes(TN, D, x_itemsize)
                       + _block_vmem_bytes(TN, Pp, 4))
    vmem_needed = 2 * (resident_bytes + pipelined_bytes) + (4 << 20)
    vmem_limit = int(max(32 << 20,
                         min(vmem_needed, (_vmem_capacity_bytes() * 3) // 4)))

    # Loop-invariant operands: when they are large (big D), keep a single VMEM
    # copy instead of the default double buffer -- they never change across the
    # N grid. (For the small-D case this is a no-op and we keep the default.)
    resident_kwargs = {}
    if 2 * resident_bytes > (8 << 20):
        resident_kwargs["pipeline_mode"] = pl.Buffered(1)
        # TODO(synk): for D >= 2048 additionally tile the D contraction with an
        # innermost "arbitrary" grid axis + f32 VMEM accumulator.

    in_specs = [
        pl.BlockSpec((TN, D), lambda i: (i, 0)),                    # x tile (pipelined)
        pl.BlockSpec((D, D), lambda i: (0, 0), **resident_kwargs),  # W^T (resident)
        pl.BlockSpec((D, Pp), lambda i: (0, 0), **resident_kwargs), # omega(protos)^T
        pl.BlockSpec((1, Pp), lambda i: (0, 0), **resident_kwargs), # ||omega(protos)||^2
    ]

    # Advisory cost estimate so XLA schedules the surrounding pad/precompute ops
    # sensibly around the custom call.
    cost = pl.CostEstimate(
        flops=2 * N * D * (D + Pp) + 6 * N * Pp,
        transcendentals=N * Pp,                       # sqrt epilogue
        bytes_accessed=(N * D * x_itemsize            # x read (unpadded!)
                        + N * Pp * 4                  # dis write
                        + D * D * mxu.itemsize        # W^T
                        + D * Pp * mxu.itemsize       # omega(protos)^T
                        + Pp * 4),                    # norms
    )

    dis_p = pl.pallas_call(
        glvq_kernel,
        out_shape=jax.ShapeDtypeStruct((N, Pp), f32),
        grid_spec=pltpu.PrefetchScalarGridSpec(
            num_scalar_prefetch=0,
            grid=(grid_n,),
            in_specs=in_specs,
            out_specs=pl.BlockSpec((TN, Pp), lambda i: (i, 0)),
        ),
        compiler_params=pltpu.CompilerParams(
            dimension_semantics=("parallel",),        # megacore split over N (v7x)
            vmem_limit_bytes=vmem_limit,
        ),
        cost_estimate=cost,
    )(x, wt_p, ptT_p, ptn_p)

    return dis_p[:, :P], plabels


if __name__ == "__main__":
    key = jax.random.PRNGKey(0)

    # Small synthetic "training data" consistent with the module's __init__:
    #   input_dim = x_train.shape[-1], nclasses = len(set(y_train)),
    #   prototypes_per_class = 1  ->  P = nclasses prototypes.
    N = 8            # number of samples
    D = 16           # input_dim
    NCLASSES = 4     # number of classes -> number of prototypes

    k_x, k_b = jax.random.split(key)
    x_train = jax.random.normal(k_x, (N, D), dtype=jnp.float32)
    y_train = jnp.arange(N, dtype=jnp.int32) % NCLASSES  # every class appears

    # Prototypes1D with 'stratified_mean': prototype j = mean of rows with label j.
    onehot = (y_train[:, None] == jnp.arange(NCLASSES)[None, :]).astype(jnp.float32)
    counts = jnp.sum(onehot, axis=0)                               # [NCLASSES]
    protos = (onehot.T @ x_train) / counts[:, None]                # [NCLASSES, D]
    plabels = jnp.arange(NCLASSES, dtype=jnp.int32)

    # omega = nn.Linear(D, D); weight.data.copy_(eye(D)). Bias keeps default
    # nn.Linear init (uniform(-1/sqrt(D), 1/sqrt(D))); it cancels in the distance.
    omega_weight = jnp.eye(D, dtype=jnp.float32)
    bound = 1.0 / jnp.sqrt(jnp.float32(D))
    omega_bias = jax.random.uniform(k_b, (D,), dtype=jnp.float32,
                                    minval=-bound, maxval=bound)

    # Reference in plain JAX (original broadcast/diff form, WITH bias).
    xt_ref = x_train @ omega_weight.T + omega_bias
    pt_ref = protos @ omega_weight.T + omega_bias
    dis_ref = jnp.sqrt(jnp.sum((xt_ref[:, None, :] - pt_ref[None, :, :]) ** 2,
                               axis=-1))

    # 1) Exact mode (f32 MXU operands): tight tolerance against the reference.
    dis_f32, labels_out = glvq_forward(x_train, protos, plabels,
                                       omega_weight, omega_bias,
                                       mxu_dtype=jnp.float32)
    dis_f32 = jax.block_until_ready(dis_f32)
    assert dis_f32.shape == (N, NCLASSES)
    assert jnp.allclose(dis_f32, dis_ref, atol=1e-3, rtol=1e-3), (
        float(jnp.max(jnp.abs(dis_f32 - dis_ref))))
    assert jnp.array_equal(labels_out, plabels)

    # 2) Fast default mode (bf16 MXU operands, f32 accumulation + epilogue):
    #    looser tolerance appropriate to bf16-rounded operands.
    dis_bf16, _ = glvq_forward(x_train, protos, plabels,
                               omega_weight, omega_bias)
    dis_bf16 = jax.block_until_ready(dis_bf16)
    assert dis_bf16.shape == (N, NCLASSES)
    assert jnp.allclose(dis_bf16, dis_ref, atol=5e-2, rtol=5e-2), (
        float(jnp.max(jnp.abs(dis_bf16 - dis_ref))))

    print("KERNEL_OK")
</pallas_src>

<mosaic_0001>
module attributes {stable_mosaic.version = 11 : i64} {
  func.func @glvq_kernel(%arg0: i32, %arg1: memref<8x16xf32, #tpu.memory_space<vmem>>, %arg2: memref<16x16xf32, #tpu.memory_space<vmem>>, %arg3: memref<16x128xf32, #tpu.memory_space<vmem>>, %arg4: memref<1x128xf32, #tpu.memory_space<vmem>>, %arg5: memref<8x128xf32, #tpu.memory_space<vmem>>) attributes {dimension_semantics = [#tpu.dimension_semantics<parallel>], iteration_bounds = array<i64: 1>, scalar_prefetch = 0 : i64, scratch_operands = 0 : i64, tpu.core_type = #tpu.core_type<tc>, window_params = [{transform_indices = @transform_0, window_bounds = array<i64: 8, 16>}, {pipeline_mode = #tpu.pipeline_mode<synchronous>, transform_indices = @transform_1, window_bounds = array<i64: 16, 16>}, {pipeline_mode = #tpu.pipeline_mode<synchronous>, transform_indices = @transform_2, window_bounds = array<i64: 16, 128>}, {pipeline_mode = #tpu.pipeline_mode<synchronous>, transform_indices = @transform_3, window_bounds = array<i64: 1, 128>}, {transform_indices = @transform_4, window_bounds = array<i64: 8, 128>}]} {
    %c0 = arith.constant 0 : index
    %c0_0 = arith.constant 0 : index
    %0 = vector.load %arg1[%c0, %c0_0] : memref<8x16xf32, #tpu.memory_space<vmem>>, vector<8x16xf32>
    %c0_1 = arith.constant 0 : index
    %c0_2 = arith.constant 0 : index
    %1 = vector.load %arg2[%c0_1, %c0_2] : memref<16x16xf32, #tpu.memory_space<vmem>>, vector<16x16xf32>
    %cst = arith.constant dense<0.000000e+00> : vector<8x16xf32>
    %2 = tpu.matmul %0, %1, %cst {dimension_numbers = #tpu.dot_dimension_numbers<[1], [0], [0], [1], [0, 0, 1, 1], [], []>} : vector<8x16xf32>, vector<16x16xf32>, vector<8x16xf32> -> vector<8x16xf32>
    %3 = arith.mulf %2, %2 : vector<8x16xf32>
    %cst_3 = arith.constant dense<0.000000e+00> : vector<8xf32>
    %4 = vector.multi_reduction <add>, %3, %cst_3 [1] : vector<8x16xf32> to vector<8xf32>
    %5 = vector.shape_cast %4 : vector<8xf32> to vector<8x1xf32>
    %c0_4 = arith.constant 0 : index
    %c0_5 = arith.constant 0 : index
    %6 = vector.load %arg3[%c0_4, %c0_5] : memref<16x128xf32, #tpu.memory_space<vmem>>, vector<16x128xf32>
    %cst_6 = arith.constant dense<0.000000e+00> : vector<8x128xf32>
    %7 = tpu.matmul %2, %6, %cst_6 {dimension_numbers = #tpu.dot_dimension_numbers<[1], [0], [0], [1], [0, 0, 1, 1], [], []>} : vector<8x16xf32>, vector<16x128xf32>, vector<8x128xf32> -> vector<8x128xf32>
    %c0_7 = arith.constant 0 : index
    %c0_8 = arith.constant 0 : index
    %8 = vector.load %arg4[%c0_7, %c0_8] : memref<1x128xf32, #tpu.memory_space<vmem>>, vector<1x128xf32>
    %9 = vector.broadcast %5 : vector<8x1xf32> to vector<8x128xf32>
    %10 = vector.broadcast %8 : vector<1x128xf32> to vector<8x128xf32>
    %11 = arith.addf %9, %10 : vector<8x128xf32>
    %cst_9 = arith.constant 2.000000e+00 : f32
    %12 = vector.broadcast %cst_9 : f32 to vector<8x128xf32>
    %13 = arith.mulf %12, %7 : vector<8x128xf32>
    %14 = arith.subf %11, %13 : vector<8x128xf32>
    %cst_10 = arith.constant 0.000000e+00 : f32
    %15 = vector.broadcast %cst_10 : f32 to vector<8x128xf32>
    %16 = arith.maximumf %14, %15 : vector<8x128xf32>
    %17 = math.sqrt %16 : vector<8x128xf32>
    %c0_11 = arith.constant 0 : index
    %c0_12 = arith.constant 0 : index
    %18 = vector.load %arg5[%c0_11, %c0_12] : memref<8x128xf32, #tpu.memory_space<vmem>>, vector<8x128xf32>
    tpu.vector_store %arg5[%c0_11, %c0_12], %17 {strides = array<i32>} : memref<8x128xf32, #tpu.memory_space<vmem>>, vector<8x128xf32>,
    return
  }
  func.func @transform_0(%arg0: i32) -> (i32, i32) {
    %c0_i32 = arith.constant 0 : i32
    %c0_i32_0 = arith.constant 0 : i32
    return %arg0, %c0_i32 : i32, i32
  }
  func.func @transform_1(%arg0: i32) -> (i32, i32) {
    %c0_i32 = arith.constant 0 : i32
    %c0_i32_0 = arith.constant 0 : i32
    %c0_i32_1 = arith.constant 0 : i32
    return %c0_i32, %c0_i32_0 : i32, i32
  }
  func.func @transform_2(%arg0: i32) -> (i32, i32) {
    %c0_i32 = arith.constant 0 : i32
    %c0_i32_0 = arith.constant 0 : i32
    %c0_i32_1 = arith.constant 0 : i32
    return %c0_i32, %c0_i32_0 : i32, i32
  }
  func.func @transform_3(%arg0: i32) -> (i32, i32) {
    %c0_i32 = arith.constant 0 : i32
    %c0_i32_0 = arith.constant 0 : i32
    %c0_i32_1 = arith.constant 0 : i32
    return %c0_i32, %c0_i32_0 : i32, i32
  }
  func.func @transform_4(%arg0: i32) -> (i32, i32) {
    %c0_i32 = arith.constant 0 : i32
    %c0_i32_0 = arith.constant 0 : i32
    return %arg0, %c0_i32 : i32, i32
  }
}

</mosaic_0001>

<bundles_post_ra>
// kernel: tpu_custom_call.1
= control target key start
LH: loop header
LB: loop body
LE: loop exit
PB: predicated region body
PF: predicated region fallthrough
CT: control target
= control target key end

     0   :  { %9 = vsyncpa [#allocation3], 0  ;;  %s317_s0 = inlined_call_operand.hbm [shape: f32[8,16], index: 0, kind: input, shape index: {}]   ;;  %s318_s1 = inlined_call_operand.hbm [shape: f32[16,16], index: 1, kind: input, shape index: {}]   ;;  %s319_s2 = inlined_call_operand.hbm [shape: f32[16,128], index: 2, kind: input, shape index: {}]   ;;  %s320_s3 = inlined_call_operand.vmem [shape: f32[1,128], index: 3, kind: input, shape index: {}]   ;;  %s321_s4 = inlined_call_operand.hbm [shape: f32[8,128], index: 4, kind: output, shape index: {}]  }
   0x1   :  { %10 = vsyncpa [#allocation6], 0  ;;  %s27_s17 = sshll.u32 %s318_s1, 4  ;;  %s28_s17 = int_to_ptr.hbm [resolvable:$true] %s27_s17 }
   0x2   :  { %11 = vsyncpa [#allocation4], 0  ;;  %s271_s18 = smov [#allocation5]   ;;  %s17_s22 = sshll.u32 %s317_s0, 4  ;;  %s18_s22 = int_to_ptr.hbm [resolvable:$true] %s17_s22 }
   0x3   :  { %s29_s19 = sshll.u32 %s271_s18, 4  ;;  %s272_s23 = smov 128   ;;  %s30_s19 = int_to_ptr.vmem [resolvable:$true] %s29_s19 }
   0x4   :  { %s273_s24 = smov 8   ;;  %s274_s25 = smov [#allocation2]  }
   0x5   :  { %35 = dma.hbm_to_vmem [thread:$0]  %s28_s17, 256, %s30_s19, [#allocation6], %s272_s23, %s272_s23, %s273_s24  }
   0x6   :  { %s19_s26 = sshll.u32 %s274_s25, 4  ;;  %s40_s29 = sshll.u32 %s319_s2, 4  ;;  %s20_s26 = int_to_ptr.vmem [resolvable:$true] %s19_s26  ;;  %s41_s29 = int_to_ptr.hbm [resolvable:$true] %s40_s29 }
   0x7   :  { %22 = dma.hbm_to_vmem [thread:$0]  %s18_s22, 128, %s20_s26, [#allocation3]  }
   0x8   :  { %s275_s1 = smov [#allocation7]  }
   0x9   :  { %s42_s30 = sshll.u32 %s275_s1, 4  ;;  %s43_s30 = int_to_ptr.vmem [resolvable:$true] %s42_s30 }
   0xa   :  { %48 = dma.hbm_to_vmem [thread:$0]  %s41_s29, 256, %s43_s30, [#allocation6], %s272_s23, %s272_s23, %s273_s24  }
   0xb   :  { %265 = dma.done.wait [#allocation3], 128  }
   0xc   :  { %266 = vsyncadd [#allocation3], 4294967168 }
   0xd   :  { %267 = dma.done.wait [#allocation6], 512  }
   0xe   :  { %268 = vsyncadd [#allocation6], 4294966784  ;;  %v65_v0 = vld [vmem:[#allocation5 + $0x8] sm:$0xff]  ;;  %v64_v1 = vld [vmem:[#allocation5] sm:$0xff]  ;;  %vm66_vm0 = vcmask 130048   ;;  %s276_s5 = smov [#allocation8]  }
   0xf   :  { %84 = vmatpush.msra.mxu0 %v65_v0  ;;  %v63_v2 = vld [vmem:[#allocation2] sm:$0xff]  ;;  %v94_v4 = vld [vmem:[#allocation7] sm:$0xff]  ;;  %s145_s6 = sshll.u32 %s276_s5, 4  ;;  %s147_s9 = sshll.u32 %s321_s4, 4  ;;  %s146_s6 = int_to_ptr.vmem [resolvable:$true] %s145_s6  ;;  %s148_s9 = int_to_ptr.hbm [resolvable:$true] %s147_s9 }
  0x10   :  { %v95_v3 = vld [vmem:[#allocation7 + $0x8] sm:$0xff] }
  0x11   :  { %113 = vmatpush.msra.mxu1 %v95_v3  ;;  %85 = vmatpush.msra.mxu0 %v64_v1  ;;  %v166_v8 = vld [vmem:[%s320_s3] ss:$0 sm:$0xff] }
  0x12   :  { %158 = vmatmul.msk.f32.vlgmr.msra.gmra.mxu0 %vm66_vm0, %v63_v2 }
  0x13   :  { %114 = vmatpush.msra.mxu1 %v94_v4 }
  0x8f   :  { %v87_v5 = vpop.f32.mrf.mxu0 }
  0x90   :  { %v90_v6 = vmul.f32 %v87_v5, %v87_v5  ;;  %159 = vmatmul.msk.f32.vlgmr.msra.gmra.mxu1 %vm66_vm0, %v87_v5 }
  0x92   :  { %v91_v7 = vsel %vm66_vm0, %v90_v6, 0.0 }
  0x93   :  { %92 = vadd.xlane.f32.xlu0 %v91_v7 }
 0x106   :  { %v93_v9 = vpop.xlane.xlu0 %92 }
 0x107   :  { %v123_v11 = vadd.f32 %v166_v8, %v93_v9 }
 0x10d   :  { %v116_v10 = vpop.f32.mrf.mxu1 }
 0x10e   :  { %v124_v12 = vmul.f32 2.0, %v116_v10 }
 0x110   :  { %v125_v13 = vsub.f32 %v123_v11, %v124_v12 }
 0x112   :  { %v126_v14 = vmax.f32 %v125_v13, 0.0 }
 0x114   :  { %167 = vrsqrt.f32 %v126_v14  ;;  %vm134_vm1 = vcmp.eq.f32.partialorder %v126_v14, inf  ;;  %v137_v22 = vand.u32 2147483648, %v126_v14  ;;  %vm136_vm2 = vcmp.eq.f32.partialorder %v126_v14, 0.0 }
 0x11a   :  { %v168_v15 = vpop.eup %167 }
 0x11b   :  { %v128_v16 = vmul.f32 %v168_v15, %v126_v14 }
 0x11d   :  { %v129_v17 = vmul.f32 %v168_v15, %v128_v16 }
 0x11f   :  { %v130_v18 = vmul.f32 0.5, %v129_v17 }
 0x121   :  { %v131_v19 = vsub.f32 1.5, %v130_v18 }
 0x123   :  { %v132_v20 = vmul.f32 %v168_v15, %v131_v19 }
 0x125   :  { %v133_v21 = vmul.f32 %v132_v20, %v126_v14 }
 0x127   :  { %v135_v23 = vsel %vm134_vm1, %v126_v14, %v133_v21 }
 0x128   :  { %v138_v24 = vsel %vm136_vm2, %v137_v22, %v135_v23 }
 0x129   :  { %139 = vst [vmem:[#allocation8] sm:$0xff] %v138_v24 }
 0x12a   :  { %150 = dma.vmem_to_hbm [thread:$0]  %s146_s6, 128, %s148_s9, [#allocation4]  }
 0x12b   :  { %269 = dma.done.wait [#allocation4], 128  }
 0x12c   :  { %270 = vsyncadd [#allocation4], 4294967168 }
 0x12d   :  { %155 = vsyncpa [#allocation3], 1 }
 0x12e   :  { %156 = vsyncpa [#allocation6], 1 }
 0x12f   :  { %157 = vsyncpa [#allocation4], 1 }

</bundles_post_ra>
